<compile_context>
chip_gen: v5e
topology: v5e:2x2
jax: 0.10.0
libtpu: 0.0.40
codegen_flags: <defaults>
</compile_context>

<pallas_src>
import functools

import jax
import jax.numpy as jnp
from jax import lax
from jax.experimental import pallas as pl
from jax.experimental.pallas import tpu as pltpu

SOFTMAX = False     # cfg.SOFTMAX -> default: sigmoid path
BETA = 0.5          # smooth_l1_loss beta
_GROUP = 32         # rows per inner accumulation step (int8 sublane tile)


def _round_up(a, b):
    return (a + b - 1) // b * b


def _cdiv(a, b):
    return -(-a // b)


def _balanced_l1_kernel(x_ref, code_ref, out_ref, acc_ref, *,
                        softmax, n_rows, last_block):
    """grid = (P parallel, T arbitrary); block = (tm, C) rows of x / code.

    code: 0 = unselected, 1 = selected negative, 2 = selected positive.
    acc_ref: VMEM (2, 8, C) f32; [0] accumulates smooth-L1 over all selected
    elements, [1] over selected positives.  Collapsed and written to a
    lane-dense (1, 8, 128) output block on the last T step of each P slice.
    """
    p_idx = pl.program_id(0)
    t_idx = pl.program_id(1)
    tiles_per_p = pl.num_programs(1)

    @pl.when(t_idx == 0)
    def _init():
        acc_ref[...] = jnp.zeros_like(acc_ref)

    tm, c = x_ref.shape
    lin = p_idx * tiles_per_p + t_idx            # un-clamped block index
    blk = jnp.minimum(lin, last_block)           # matches the index_map clamp
    # Surplus grid steps (lin > last_block) re-read the final block but must
    # contribute nothing: give them a zero row limit.
    row_limit = jnp.where(lin > last_block, 0, n_rows)
    base = blk * tm

    if softmax:
        # Row-sum of exp() through the otherwise-idle MXU (ones matmul) so the
        # XLU only carries the row max (XLU binds on v6e/v7x otherwise).
        ones_mat = jnp.ones((c, 128), jnp.float32)

    n_groups = tm // _GROUP

    def body(g, carry):
        r0 = pl.multiple_of(g * _GROUP, _GROUP)
        rows = base + r0 + lax.broadcasted_iota(jnp.int32, (_GROUP, c), 0)
        valid = rows < row_limit

        x = x_ref[pl.ds(r0, _GROUP), :].astype(jnp.float32)
        code = code_ref[pl.ds(r0, _GROUP), :].astype(jnp.int32)

        if softmax:
            x = jnp.where(valid, x, 0.0)         # keep tail-row exp() finite
            m = jnp.max(x, axis=1, keepdims=True)
            e = jnp.exp(x - m)
            s = jnp.dot(e, ones_mat, preferred_element_type=jnp.float32)[:, 0:1]
            p = e / s
        else:
            p = 1.0 / (1.0 + jnp.exp(-x))

        pos = (code == 2) & valid                # selected positives
        sel = (code != 0) & valid                # all selected elements
        t = pos.astype(jnp.float32)              # binary target (selected only)

        d = jnp.abs(p - t)
        l = jnp.where(d < BETA, (0.5 / BETA) * d * d, d - 0.5 * BETA)

        q_sel = jnp.where(sel, l, 0.0)
        q_pos = jnp.where(pos, l, 0.0)

        def fold8(v):                            # (_GROUP, c) -> (8, c), VPU adds
            while v.shape[0] > 8:
                h = v.shape[0] // 2
                v = v[:h] + v[h:]
            return v

        acc_ref[0] += fold8(q_sel)
        acc_ref[1] += fold8(q_pos)
        return carry

    lax.fori_loop(0, n_groups, body, 0)

    @pl.when(t_idx == tiles_per_p - 1)
    def _fin():
        s_sel = jnp.sum(acc_ref[0])
        s_pos = jnp.sum(acc_ref[1])
        lane = lax.broadcasted_iota(jnp.int32, out_ref.shape, 2)
        out_ref[...] = jnp.where(lane == 0, s_sel,
                                 jnp.where(lane == 1, s_pos, 0.0))


def _balanced_sample_code(target, key):
    """Single-sort balanced subsampling (same distribution as torch's
    shuffle-and-truncate).  Returns:
      code: int8 (N, C): 0 = unselected, 1 = selected negative, 2 = selected pos
      cnt_pos, cnt_neg: exact int32 kept-element counts per group.
    """
    is_pos = (target != 0).reshape(-1)
    size = is_pos.shape[0]
    num_pos = jnp.sum(is_pos.astype(jnp.int32))
    num_neg = size - num_pos
    n = jnp.minimum(num_pos, num_neg) * 2 + 3

    u = jax.random.uniform(key, (size,), dtype=jnp.float32)      # [0, 1)
    sort_keys = jnp.where(is_pos, u, u + 2.0)    # positives sort first
    order = jnp.argsort(sort_keys)
    ranks = jnp.arange(size, dtype=jnp.int32)
    in_group_rank = jnp.where(ranks < num_pos, ranks, ranks - num_pos)
    keep_sorted = in_group_rank < n
    keep = jnp.zeros((size,), jnp.bool_).at[order].set(keep_sorted)

    code = jnp.where(keep, jnp.where(is_pos, 2, 1), 0).astype(jnp.int8)
    cnt_pos = jnp.minimum(num_pos, n)
    cnt_neg = jnp.minimum(num_neg, n)
    return code.reshape(target.shape), cnt_pos, cnt_neg


@functools.partial(jax.jit,
                   static_argnames=("softmax", "tile_m", "num_parallel"))
def abnormal_balanced_l1_loss(x, target, key, softmax=SOFTMAX,
                              tile_m=512, num_parallel=1):
    N, C = x.shape

    # Balanced subsampling + exact group counts (int32), outside the kernel.
    code, cnt_pos, cnt_neg = _balanced_sample_code(target, key)

    # --- tiling (no materialized pads; grid over-covers, kernel masks) -----
    x_bytes = x.dtype.itemsize
    vmem_budget = 16 * 1024 * 1024                       # double-buffered inputs
    tm_cap = max(_GROUP,
                 (vmem_budget // (2 * C * (x_bytes + 1))) // _GROUP * _GROUP)
    tm = min(_round_up(max(tile_m, _GROUP), _GROUP), tm_cap)
    if N >= _GROUP:
        tm = min(tm, (N // _GROUP) * _GROUP)
    # (If N < 32 the single 32-row block over-covers the whole array; the tail
    #  rows are masked in-kernel just like a normal partial last block.)

    total_tiles = _cdiv(N, tm)
    num_parallel = max(1, min(num_parallel, total_tiles))
    tiles_per_p = _cdiv(total_tiles, num_parallel)
    last_block = total_tiles - 1

    if num_parallel * tiles_per_p == total_tiles:
        row_map = lambda p, t: (p * tiles_per_p + t, 0)
    else:  # uneven split: clamp surplus steps onto the last real block
        row_map = lambda p, t: (jnp.minimum(p * tiles_per_p + t, last_block), 0)

    x_spec = pl.BlockSpec((tm, C), row_map)
    code_spec = pl.BlockSpec((tm, C), row_map)

    kernel = functools.partial(_balanced_l1_kernel, softmax=softmax,
                               n_rows=N, last_block=last_block)

    out = pl.pallas_call(
        kernel,
        out_shape=jax.ShapeDtypeStruct((num_parallel, 8, 128), jnp.float32),
        grid_spec=pltpu.PrefetchScalarGridSpec(
            num_scalar_prefetch=0,
            grid=(num_parallel, tiles_per_p),
            in_specs=[x_spec, code_spec],
            out_specs=pl.BlockSpec((1, 8, 128), lambda p, t: (p, 0, 0)),
            scratch_shapes=[pltpu.VMEM((2, 8, C), jnp.float32)],
        ),
        compiler_params=pltpu.CompilerParams(
            dimension_semantics=("parallel", "arbitrary")),
    )(x, code)

    # lanes: 0 = sum of all selected losses, 1 = sum of selected-positive losses
    s_sel = jnp.sum(out[:, 0, 0])
    s_pos = jnp.sum(out[:, 0, 1])
    s_neg = s_sel - s_pos

    cp = cnt_pos.astype(jnp.float32)
    cn = cnt_neg.astype(jnp.float32)
    loss_pos = jnp.where(cnt_pos > 0, s_pos / jnp.maximum(cp, 1.0), 0.0)
    loss_neg = jnp.where(cnt_neg > 0, s_neg / jnp.maximum(cn, 1.0), 0.0)
    return loss_pos + loss_neg


def _reference_loss(x, code, cnt_pos, cnt_neg, softmax):
    """Pure-JAX reference using the same selection code (for sanity checking)."""
    xf = x.astype(jnp.float32)
    p = jax.nn.softmax(xf, axis=1) if softmax else jax.nn.sigmoid(xf)
    t = (code == 2).astype(jnp.float32)
    d = jnp.abs(p - t)
    l = jnp.where(d < BETA, 0.5 * d * d / BETA, d - 0.5 * BETA)
    s_pos = jnp.sum(jnp.where(code == 2, l, 0.0))
    s_neg = jnp.sum(jnp.where(code == 1, l, 0.0))
    cp = cnt_pos.astype(jnp.float32)
    cn = cnt_neg.astype(jnp.float32)
    lp = jnp.where(cnt_pos > 0, s_pos / jnp.maximum(cp, 1.0), 0.0)
    ln = jnp.where(cnt_neg > 0, s_neg / jnp.maximum(cn, 1.0), 0.0)
    return lp + ln


if __name__ == "__main__":
    key = jax.random.PRNGKey(0)
    k_x, k_t, k_sample = jax.random.split(key, 3)

    # exercises tail-row masking (48 rows -> 2x32-row blocks) and a non-128
    # lane width (C = 96 = full-array block width, no padding).
    N, C = 48, 96
    x = jax.random.normal(k_x, (N, C), dtype=jnp.float32)
    target = (jax.random.uniform(k_t, (N, C)) < 0.1).astype(jnp.float32)

    loss_sigmoid = abnormal_balanced_l1_loss(x, target, k_sample, softmax=False)
    loss_softmax = abnormal_balanced_l1_loss(x, target, k_sample, softmax=True)
    jax.block_until_ready((loss_sigmoid, loss_softmax))

    # sanity check against a pure-JAX reference using the same selection mask
    code, cp, cn = _balanced_sample_code(target, k_sample)
    ref_sigmoid = _reference_loss(x, code, cp, cn, False)
    ref_softmax = _reference_loss(x, code, cp, cn, True)

    def _close(a, b):
        a = float(a); b = float(b)
        return abs(a - b) <= 2e-2 + 5e-2 * abs(b)

    assert _close(loss_sigmoid, ref_sigmoid), (float(loss_sigmoid), float(ref_sigmoid))
    assert _close(loss_softmax, ref_softmax), (float(loss_softmax), float(ref_softmax))

    print("KERNEL_OK")
</pallas_src>

<mosaic_0001>
module attributes {stable_mosaic.version = 11 : i64} {
  func.func @_balanced_l1_kernel(%arg0: i32, %arg1: i32, %arg2: memref<32x96xf32, #tpu.memory_space<vmem>>, %arg3: memref<32x96xi8, #tpu.memory_space<vmem>>, %arg4: memref<1x8x128xf32, #tpu.memory_space<vmem>>, %arg5: memref<2x8x96xf32, #tpu.memory_space<vmem>>) attributes {dimension_semantics = [#tpu.dimension_semantics<parallel>, #tpu.dimension_semantics<arbitrary>], iteration_bounds = array<i64: 1, 2>, scalar_prefetch = 0 : i64, scratch_operands = 1 : i64, tpu.core_type = #tpu.core_type<tc>, window_params = [{transform_indices = @transform_0, window_bounds = array<i64: 32, 96>}, {transform_indices = @transform_1, window_bounds = array<i64: 32, 96>}, {transform_indices = @transform_2, window_bounds = array<i64: 1, 8, 128>}]} {
    %c0_i32 = arith.constant 0 : i32
    %0 = arith.cmpi eq, %arg1, %c0_i32 : i32
    %1 = arith.extui %0 : i1 to i32
    %c0_i32_0 = arith.constant 0 : i32
    %2 = arith.cmpi ne, %1, %c0_i32_0 : i32
    scf.if %2 {
      %cst_29 = arith.constant 0.000000e+00 : f32
      %78 = vector.broadcast %cst_29 : f32 to vector<2x8x96xf32>
      %c0_30 = arith.constant 0 : index
      %c0_31 = arith.constant 0 : index
      %c0_32 = arith.constant 0 : index
      %79 = vector.load %arg5[%c0_30, %c0_31, %c0_32] : memref<2x8x96xf32, #tpu.memory_space<vmem>>, vector<2x8x96xf32>
      tpu.vector_store %arg5[%c0_30, %c0_31, %c0_32], %78 {strides = array<i32>} : memref<2x8x96xf32, #tpu.memory_space<vmem>>, vector<2x8x96xf32>,
    } else {
    }
    %c2_i32 = arith.constant 2 : i32
    %3 = arith.muli %arg0, %c2_i32 : i32
    %4 = arith.addi %3, %arg1 : i32
    %c1_i32 = arith.constant 1 : i32
    %5 = arith.minsi %4, %c1_i32 : i32
    %c1_i32_1 = arith.constant 1 : i32
    %6 = arith.cmpi sgt, %4, %c1_i32_1 : i32
    %c0_i32_2 = arith.constant 0 : i32
    %c48_i32 = arith.constant 48 : i32
    %7 = arith.select %6, %c0_i32_2, %c48_i32 : i32
    %c32_i32 = arith.constant 32 : i32
    %8 = arith.muli %5, %c32_i32 : i32
    %c0_i32_3 = arith.constant 0 : i32
    %c32_i32_4 = arith.constant 32 : i32
    %9 = arith.muli %c0_i32_3, %c32_i32_4 : i32
    %10 = tpu.assume_multiple %9, 32 : i32
    %11 = arith.addi %8, %10 : i32
    %12 = tpu.iota {dimensions = array<i32: 0>} : vector<32x96xi32>
    %13 = vector.broadcast %11 : i32 to vector<32x96xi32>
    %14 = arith.addi %13, %12 : vector<32x96xi32>
    %15 = vector.broadcast %7 : i32 to vector<32x96xi32>
    %16 = arith.cmpi slt, %14, %15 : vector<32x96xi32>
    %17 = arith.index_cast %10 : i32 to index
    %c0 = arith.constant 0 : index
    %18 = vector.load %arg2[%17, %c0] : memref<32x96xf32, #tpu.memory_space<vmem>>, vector<32x96xf32>
    %19 = arith.index_cast %10 : i32 to index
    %c0_5 = arith.constant 0 : index
    %20 = vector.load %arg3[%19, %c0_5] : memref<32x96xi8, #tpu.memory_space<vmem>>, vector<32x96xi8>
    %21 = arith.extsi %20 : vector<32x96xi8> to vector<32x96xi32>
    %cst = arith.constant 0.000000e+00 : f32
    %22 = vector.broadcast %cst : f32 to vector<32x96xf32>
    %23 = arith.subf %22, %18 : vector<32x96xf32>
    %24 = math.exp %23 : vector<32x96xf32>
    %cst_6 = arith.constant 1.000000e+00 : f32
    %25 = vector.broadcast %cst_6 : f32 to vector<32x96xf32>
    %26 = arith.addf %25, %24 : vector<32x96xf32>
    %cst_7 = arith.constant 1.000000e+00 : f32
    %27 = vector.broadcast %cst_7 : f32 to vector<32x96xf32>
    %28 = arith.divf %27, %26 : vector<32x96xf32>
    %c2_i32_8 = arith.constant 2 : i32
    %29 = vector.broadcast %c2_i32_8 : i32 to vector<32x96xi32>
    %30 = arith.cmpi eq, %21, %29 : vector<32x96xi32>
    %31 = arith.andi %30, %16 : vector<32x96xi1>
    %c0_i32_9 = arith.constant 0 : i32
    %32 = vector.broadcast %c0_i32_9 : i32 to vector<32x96xi32>
    %33 = arith.cmpi ne, %21, %32 : vector<32x96xi32>
    %34 = arith.andi %33, %16 : vector<32x96xi1>
    %35 = arith.extui %31 : vector<32x96xi1> to vector<32x96xi32>
    %36 = arith.sitofp %35 : vector<32x96xi32> to vector<32x96xf32>
    %37 = arith.subf %28, %36 : vector<32x96xf32>
    %38 = math.absf %37 : vector<32x96xf32>
    %cst_10 = arith.constant 5.000000e-01 : f32
    %39 = vector.broadcast %cst_10 : f32 to vector<32x96xf32>
    %40 = arith.cmpf olt, %38, %39 : vector<32x96xf32>
    %cst_11 = arith.constant 1.000000e+00 : f32
    %41 = vector.broadcast %cst_11 : f32 to vector<32x96xf32>
    %42 = arith.mulf %41, %38 : vector<32x96xf32>
    %43 = arith.mulf %42, %38 : vector<32x96xf32>
    %cst_12 = arith.constant 2.500000e-01 : f32
    %44 = vector.broadcast %cst_12 : f32 to vector<32x96xf32>
    %45 = arith.subf %38, %44 : vector<32x96xf32>
    %46 = arith.select %40, %43, %45 : vector<32x96xi1>, vector<32x96xf32>
    %cst_13 = arith.constant 0.000000e+00 : f32
    %47 = vector.broadcast %cst_13 : f32 to vector<32x96xf32>
    %48 = arith.select %34, %46, %47 : vector<32x96xi1>, vector<32x96xf32>
    %cst_14 = arith.constant 0.000000e+00 : f32
    %49 = vector.broadcast %cst_14 : f32 to vector<32x96xf32>
    %50 = arith.select %31, %46, %49 : vector<32x96xi1>, vector<32x96xf32>
    %c0_15 = arith.constant 0 : index
    %c0_16 = arith.constant 0 : index
    %c0_17 = arith.constant 0 : index
    %51 = vector.load %arg5[%c0_15, %c0_16, %c0_17] : memref<2x8x96xf32, #tpu.memory_space<vmem>>, vector<1x8x96xf32>
    %52 = vector.shape_cast %51 : vector<1x8x96xf32> to vector<8x96xf32>
    %53 = vector.extract_strided_slice %48 {offsets = [0, 0], sizes = [16, 96], strides = [1, 1]} : vector<32x96xf32> to vector<16x96xf32>
    %54 = vector.extract_strided_slice %48 {offsets = [16, 0], sizes = [16, 96], strides = [1, 1]} : vector<32x96xf32> to vector<16x96xf32>
    %55 = arith.addf %53, %54 : vector<16x96xf32>
    %56 = vector.extract_strided_slice %55 {offsets = [0, 0], sizes = [8, 96], strides = [1, 1]} : vector<16x96xf32> to vector<8x96xf32>
    %57 = vector.extract_strided_slice %55 {offsets = [8, 0], sizes = [8, 96], strides = [1, 1]} : vector<16x96xf32> to vector<8x96xf32>
    %58 = arith.addf %56, %57 : vector<8x96xf32>
    %59 = arith.addf %52, %58 : vector<8x96xf32>
    %c0_18 = arith.constant 0 : index
    %c0_19 = arith.constant 0 : index
    %c0_20 = arith.constant 0 : index
    %60 = vector.load %arg5[%c0_18, %c0_19, %c0_20] : memref<2x8x96xf32, #tpu.memory_space<vmem>>, vector<1x8x96xf32>
    %61 = vector.shape_cast %60 : vector<1x8x96xf32> to vector<8x96xf32>
    %62 = vector.shape_cast %59 : vector<8x96xf32> to vector<1x8x96xf32>
    tpu.vector_store %arg5[%c0_18, %c0_19, %c0_20], %62 {strides = array<i32>} : memref<2x8x96xf32, #tpu.memory_space<vmem>>, vector<1x8x96xf32>,
    %c1 = arith.constant 1 : index
    %c0_21 = arith.constant 0 : index
    %c0_22 = arith.constant 0 : index
    %63 = vector.load %arg5[%c1, %c0_21, %c0_22] : memref<2x8x96xf32, #tpu.memory_space<vmem>>, vector<1x8x96xf32>
    %64 = vector.shape_cast %63 : vector<1x8x96xf32> to vector<8x96xf32>
    %65 = vector.extract_strided_slice %50 {offsets = [0, 0], sizes = [16, 96], strides = [1, 1]} : vector<32x96xf32> to vector<16x96xf32>
    %66 = vector.extract_strided_slice %50 {offsets = [16, 0], sizes = [16, 96], strides = [1, 1]} : vector<32x96xf32> to vector<16x96xf32>
    %67 = arith.addf %65, %66 : vector<16x96xf32>
    %68 = vector.extract_strided_slice %67 {offsets = [0, 0], sizes = [8, 96], strides = [1, 1]} : vector<16x96xf32> to vector<8x96xf32>
    %69 = vector.extract_strided_slice %67 {offsets = [8, 0], sizes = [8, 96], strides = [1, 1]} : vector<16x96xf32> to vector<8x96xf32>
    %70 = arith.addf %68, %69 : vector<8x96xf32>
    %71 = arith.addf %64, %70 : vector<8x96xf32>
    %c1_23 = arith.constant 1 : index
    %c0_24 = arith.constant 0 : index
    %c0_25 = arith.constant 0 : index
    %72 = vector.load %arg5[%c1_23, %c0_24, %c0_25] : memref<2x8x96xf32, #tpu.memory_space<vmem>>, vector<1x8x96xf32>
    %73 = vector.shape_cast %72 : vector<1x8x96xf32> to vector<8x96xf32>
    %74 = vector.shape_cast %71 : vector<8x96xf32> to vector<1x8x96xf32>
    tpu.vector_store %arg5[%c1_23, %c0_24, %c0_25], %74 {strides = array<i32>} : memref<2x8x96xf32, #tpu.memory_space<vmem>>, vector<1x8x96xf32>,
    %c1_i32_26 = arith.constant 1 : i32
    %c1_i32_27 = arith.constant 1 : i32
    %75 = arith.cmpi eq, %arg1, %c1_i32_27 : i32
    %76 = arith.extui %75 : i1 to i32
    %c0_i32_28 = arith.constant 0 : i32
    %77 = arith.cmpi ne, %76, %c0_i32_28 : i32
    scf.if %77 {
      %c0_29 = arith.constant 0 : index
      %c0_30 = arith.constant 0 : index
      %c0_31 = arith.constant 0 : index
      %78 = vector.load %arg5[%c0_29, %c0_30, %c0_31] : memref<2x8x96xf32, #tpu.memory_space<vmem>>, vector<1x8x96xf32>
      %79 = vector.shape_cast %78 : vector<1x8x96xf32> to vector<8x96xf32>
      %80 = vector.shape_cast %79 : vector<8x96xf32> to vector<1x8x96xf32>
      %cst_32 = arith.constant dense<0.000000e+00> : vector<1xf32>
      %81 = vector.multi_reduction <add>, %80, %cst_32 [1, 2] : vector<1x8x96xf32> to vector<1xf32>
      %82 = vector.shape_cast %81 : vector<1xf32> to vector<1x1x1xf32>
      %83 = vector.extract %82[0, 0, 0] : f32 from vector<1x1x1xf32>
      %c1_33 = arith.constant 1 : index
      %c0_34 = arith.constant 0 : index
      %c0_35 = arith.constant 0 : index
      %84 = vector.load %arg5[%c1_33, %c0_34, %c0_35] : memref<2x8x96xf32, #tpu.memory_space<vmem>>, vector<1x8x96xf32>
      %85 = vector.shape_cast %84 : vector<1x8x96xf32> to vector<8x96xf32>
      %86 = vector.shape_cast %85 : vector<8x96xf32> to vector<1x8x96xf32>
      %cst_36 = arith.constant dense<0.000000e+00> : vector<1xf32>
      %87 = vector.multi_reduction <add>, %86, %cst_36 [1, 2] : vector<1x8x96xf32> to vector<1xf32>
      %88 = vector.shape_cast %87 : vector<1xf32> to vector<1x1x1xf32>
      %89 = vector.extract %88[0, 0, 0] : f32 from vector<1x1x1xf32>
      %90 = tpu.iota {dimensions = array<i32: 2>} : vector<1x8x128xi32>
      %c0_i32_37 = arith.constant 0 : i32
      %91 = vector.broadcast %c0_i32_37 : i32 to vector<1x8x128xi32>
      %92 = arith.cmpi eq, %90, %91 : vector<1x8x128xi32>
      %c1_i32_38 = arith.constant 1 : i32
      %93 = vector.broadcast %c1_i32_38 : i32 to vector<1x8x128xi32>
      %94 = arith.cmpi eq, %90, %93 : vector<1x8x128xi32>
      %cst_39 = arith.constant 0.000000e+00 : f32
      %95 = vector.broadcast %89 : f32 to vector<1x8x128xf32>
      %96 = vector.broadcast %cst_39 : f32 to vector<1x8x128xf32>
      %97 = arith.select %94, %95, %96 : vector<1x8x128xi1>, vector<1x8x128xf32>
      %98 = vector.broadcast %83 : f32 to vector<1x8x128xf32>
      %99 = arith.select %92, %98, %97 : vector<1x8x128xi1>, vector<1x8x128xf32>
      %c0_40 = arith.constant 0 : index
      %c0_41 = arith.constant 0 : index
      %c0_42 = arith.constant 0 : index
      %100 = vector.load %arg4[%c0_40, %c0_41, %c0_42] : memref<1x8x128xf32, #tpu.memory_space<vmem>>, vector<1x8x128xf32>
      tpu.vector_store %arg4[%c0_40, %c0_41, %c0_42], %99 {strides = array<i32>} : memref<1x8x128xf32, #tpu.memory_space<vmem>>, vector<1x8x128xf32>,
    } else {
    }
    return
  }
  func.func @transform_0(%arg0: i32, %arg1: i32) -> (i32, i32) {
    %c2_i32 = arith.constant 2 : i32
    %0 = arith.muli %arg0, %c2_i32 : i32
    %1 = arith.addi %0, %arg1 : i32
    %c0_i32 = arith.constant 0 : i32
    %c0_i32_0 = arith.constant 0 : i32
    return %1, %c0_i32 : i32, i32
  }
  func.func @transform_1(%arg0: i32, %arg1: i32) -> (i32, i32) {
    %c2_i32 = arith.constant 2 : i32
    %0 = arith.muli %arg0, %c2_i32 : i32
    %1 = arith.addi %0, %arg1 : i32
    %c0_i32 = arith.constant 0 : i32
    %c0_i32_0 = arith.constant 0 : i32
    return %1, %c0_i32 : i32, i32
  }
  func.func @transform_2(%arg0: i32, %arg1: i32) -> (i32, i32, i32) {
    %c0_i32 = arith.constant 0 : i32
    %c0_i32_0 = arith.constant 0 : i32
    %c0_i32_1 = arith.constant 0 : i32
    return %arg0, %c0_i32, %c0_i32_0 : i32, i32, i32
  }
}

</mosaic_0001>

<bundles_post_ra>
// kernel: abnormal_balanced_l1_loss.1
= control target key start
LH: loop header
LB: loop body
LE: loop exit
PB: predicated region body
PF: predicated region fallthrough
CT: control target
= control target key end

     0   :  { %s658_s9 = smov 0   ;;  %s660_s10 = smov 0   ;;  %s923_s0 = inlined_call_operand.vmem [shape: f32[48,96], index: 0, kind: input, shape index: {}]   ;;  %s924_s1 = inlined_call_operand.vmem [shape: s8[48,96], index: 1, kind: input, shape index: {}]   ;;  %s925_s2 = inlined_call_operand.vmem [shape: f32[1,8,128], index: 2, kind: output, shape index: {}]  }
   0x1   :  { %s662_s11 = smov 0  }
   0x2 LB: > { %s21_s12 = sadd.s32 1, %s635_s10  ;;  %p543_p0 = scmp.ge.s32.totalorder %s639_s11, 1  ;;  %s639_s11 = sphi %s662_s11, %s12_s11   ;;  %s635_s10 = sphi %s660_s10, %s974_s10   ;;  %s631_s9 = sphi %s658_s9, %s973_s9  }
   0x3   : > { %p22_p1 = scmp.ge.s32.totalorder %s21_s12, 2  ;;  %p168_p2 = scmp.lt.s32.totalorder %s639_s11, 3 }
   0x5   : > { %s976_s12 = smov (%p22_p1, %s21_s12), 0  ;;  %p169_p3 = pnand %p543_p0, %p168_p2 }
   0x6   : > { %s544_s13 = sshll.u32 (!%p169_p3), %s631_s9, 2  ;;  %p548_p5 = scmp.ne.s32.totalorder (!%p169_p3), %s631_s9, 0 }
   0x7   : > { %172 = sbr.rel (%p169_p3) target bundleno = 267 (0x10b), region = 28  ;;  %p213_p4 = scmp.lt.s32.totalorder (!%p169_p3), %s544_s13, 5 }
   0xc   : > { %s978_s13 = smov (!%p213_p4, %s544_s13), 5  ;;  %249 = sbr.rel (%p548_p5) target bundleno = 20 (0x14), region = 32 }
   0xd   : > { %s545_s14 = sshll.u32 %s978_s13, 3  ;;  %s547_s15 = sshll.u32 %s978_s13, 1 }
   0xe   : > { %s216_s18 = scalar_lea.vmem %s923_s0, %s545_s14  ;;  %s685_s21 = scalar_lea.vmem %s924_s1, %s547_s15 }
  0x11   : > { %vm250_vm0 = vcmask 785408   ;;  %v641_v0 = vmov 0.0  }
  0x12   : > { %251 = vst.msk [vmem:[#allocation2] sm:$0xff] %vm250_vm0, %v641_v0 }
  0x13   : > { %252 = vst.msk [vmem:[#allocation2 + $0x8] sm:$0xff] %vm250_vm0, %v641_v0 }
  0x14 PF: > { %p255_p6 = scmp.lt.s32.totalorder %s631_s9, 1  ;;  %v261_v1 = vlaneseq  ;;  %v276_v2 = vld [vmem:[%s216_s18] sm:$0xff]  ;;  %v277_v3 = vld [vmem:[%s216_s18 + $0x8] sm:$0xff]  ;;  %v278_v4 = vld [vmem:[%s216_s18 + $0x10] sm:$0xff]  ;;  %p257_p7 = scmp.gt.s32.totalorder %s631_s9, 1  ;;  %v642_v45 = vmov 0.0  }
  0x15   : > { %v279_v5 = vld [vmem:[%s216_s18 + $0x18] sm:$0xff]  ;;  %v288_v6 = vsub.f32 0.0, %v276_v2  ;;  %v289_v7 = vsub.f32 0.0, %v277_v3  ;;  %v290_v8 = vsub.f32 0.0, %v278_v4  ;;  %v693_v17 = vld [vmem:[%s685_s21] sm:$0xff]   ;;  %p558_p8 = scmp.ne.s32.totalorder %s631_s9, 1 }
  0x16   : > { %s256_s22 = scalar_select %p255_p6, %s631_s9, 1  ;;  %v291_v9 = vsub.f32 0.0, %v279_v5  ;;  %v262_v11 = vshrl.u32 %v261_v1, 7  ;;  %v564_v22 = vunpack.c.0.s8 %v693_v17  ;;  %v565_v25 = vunpack.c.1.s8 %v693_v17 }
  0x17   : > { %v292_v10 = vmul.f32 1.442695, %v288_v6  ;;  %v294_v12 = vmul.f32 1.442695, %v289_v7  ;;  %v296_v13 = vmul.f32 1.442695, %v290_v8  ;;  %v568_v34 = vunpack.c.2.s8 %v693_v17 }
  0x18   : > { %s549_s23 = sshll.u32 %s256_s22, 5  ;;  %v298_v14 = vmul.f32 1.442695, %v291_v9  ;;  %v263_v15 = vadd.s32 8, %v262_v11  ;;  %v264_v19 = vadd.s32 16, %v262_v11  ;;  %v265_v20 = vadd.s32 24, %v262_v11 }
  0x19   : > { %601 = vpow2.f32 %v292_v10  ;;  %s258_s24 = scalar_select %p257_p7, 0, 48  ;;  %v266_v16 = vstv %s549_s23  ;;  %vm364_vm2 = vcmp.eq.s32.totalorder %v564_v22, 2  ;;  %vm365_vm4 = vcmp.eq.s32.totalorder %v565_v25, 2 }
  0x1a   : > { %603 = vpow2.f32 %v294_v12  ;;  %v695_v21 = vadd.s32 %v266_v16, %v262_v11  ;;  %v698_v23 = vadd.s32 %v266_v16, %v263_v15  ;;  %v705_v30 = vadd.s32 %v266_v16, %v264_v19  ;;  %v428_v39 = vld [vmem:[#allocation2 + $0x8] sm:$0xff] }
  0x1b   : > { %605 = vpow2.f32 %v296_v13  ;;  %v700_v24 = vstv %s258_s24  ;;  %v707_v31 = vadd.s32 %v266_v16, %v265_v20  ;;  %v569_v35 = vunpack.c.3.s8 %v693_v17 }
  0x1c   : > { %607 = vpow2.f32 %v298_v14  ;;  %vm927_vm1 = vcmp.lt.s32.totalorder %v695_v21, %v700_v24  ;;  %vm926_vm3 = vcmp.lt.s32.totalorder %v698_v23, %v700_v24  ;;  %vm928_vm7 = vcmp.lt.s32.totalorder %v705_v30, %v700_v24 }
  0x1d   : > { %vm726_vm5 = vmand %vm364_vm2, %vm927_vm1  ;;  %vm275_vm8 = vcmp.lt.s32.totalorder %v707_v31, %v700_v24  ;;  %vm744_vm9 = vcmp.eq.s32.totalorder %v568_v34, 2  ;;  %vm750_vm10 = vcmp.eq.s32.totalorder %v569_v35, 2 }
  0x1e   : > { %vm734_vm6 = vmand %vm365_vm4, %vm926_vm3  ;;  %v550_v46 = vsel %vm726_vm5, 1.0, %v642_v45  ;;  %vm777_vm4 = vcmp.ne.s32.totalorder %v564_v22, 0 }
  0x1f   : > { %v602_v18 = vpop.eup %601  ;;  %v551_v50 = vsel %vm734_vm6, 1.0, %v642_v45 }
  0x20   : > { %v300_v26 = vadd.f32 1.0, %v602_v18  ;;  %v604_v27 = vpop.eup %603 }
  0x21   : > { %v703_v28 = vadd.f32 1.0, %v604_v27  ;;  %v606_v29 = vpop.eup %605 }
  0x22   : > { %609 = vrcp.f32 %v300_v26  ;;  %v608_v32 = vpop.eup %607  ;;  %v713_v33 = vadd.f32 1.0, %v606_v29  ;;  %v313_v37 = vand.u32 2147483647, %v300_v26  ;;  %v315_v41 = vand.u32 2147483648, %v300_v26 }
  0x23   : > { %611 = vrcp.f32 %v703_v28  ;;  %v720_v36 = vadd.f32 1.0, %v608_v32  ;;  %vm309_vm11 = vweird.f32 %v300_v26  ;;  %v330_v49 = vand.u32 2147483648, %v703_v28 }
  0x24   : > { %613 = vrcp.f32 %v713_v33  ;;  %vm756_vm12 = vcmp.eq.f32.partialorder %v313_v37, 8.507059e+37  ;;  %vm324_vm14 = vweird.f32 %v703_v28  ;;  %v316_v54 = vor.u32 1.1754944e-38, %v315_v41 }
  0x25   : > { %615 = vrcp.f32 %v720_v36  ;;  %v328_v55 = vand.u32 2147483647, %v703_v28  ;;  %v343_v56 = vand.u32 2147483647, %v713_v33  ;;  %v331_v62 = vor.u32 1.1754944e-38, %v330_v49 }
  0x26   : > { %v345_v63 = vand.u32 2147483648, %v713_v33  ;;  %v360_v2 = vand.u32 2147483648, %v720_v36  ;;  %vm354_vm1 = vweird.f32 %v720_v36  ;;  %v358_v10 = vand.u32 2147483647, %v720_v36 }
  0x28   : > { %v610_v40 = vpop.eup %609  ;;  %v346_v19 = vor.u32 1.1754944e-38, %v345_v63 }
  0x29   : > { %v305_v42 = vmul.f32 %v610_v40, %v300_v26  ;;  %v612_v47 = vpop.eup %611  ;;  %vm310_vm13 = vweird.f32 %v610_v40 }
  0x2a   : > { %v320_v52 = vmul.f32 %v612_v47, %v703_v28  ;;  %v614_v53 = vpop.eup %613  ;;  %vm325_vm0 = vweird.f32 %v612_v47  ;;  %vm770_vm2 = vmor %vm309_vm11, %vm310_vm13  ;;  %v361_v28 = vor.u32 1.1754944e-38, %v360_v2 }
  0x2b   : > { %v306_v51 = vsub.f32 1.0, %v305_v42  ;;  %v616_v57 = vpop.eup %615  ;;  %v335_v60 = vmul.f32 %v614_v53, %v713_v33  ;;  %vm340_vm3 = vweird.f32 %v614_v53  ;;  %vm786_vm11 = vmand %vm744_vm9, %vm928_vm7  ;;  %vm329_vm9 = vcmp.eq.f32.partialorder %v328_v55, 8.507059e+37 }
  0x2c   : > { %v321_v59 = vsub.f32 1.0, %v320_v52  ;;  %v350_v0 = vmul.f32 %v616_v57, %v720_v36  ;;  %vm792_vm13 = vmor %vm324_vm14, %vm325_vm0  ;;  %vm355_vm15 = vweird.f32 %v616_v57  ;;  %vm949_vm0 = vweird.f32 %v713_v33 }
  0x2d   : > { %v307_v58 = vmul.f32 %v610_v40, %v306_v51  ;;  %v336_v6 = vsub.f32 1.0, %v335_v60  ;;  %vm805_vm14 = vmand %vm750_vm10, %vm275_vm8  ;;  %v552_v37 = vsel %vm786_vm11, 1.0, %v642_v45 }
  0x2e   : > { %v322_v5 = vmul.f32 %v612_v47, %v321_v59  ;;  %v351_v9 = vsub.f32 1.0, %v350_v0  ;;  %vm813_vm7 = vmor %vm949_vm0, %vm340_vm3  ;;  %vm359_vm3 = vcmp.eq.f32.partialorder %v358_v10, 8.507059e+37  ;;  %v553_v41 = vsel %vm805_vm14, 1.0, %v642_v45  ;;  %v420_v10 = vld [vmem:[#allocation2] sm:$0xff] }
  0x2f   : > { %v308_v4 = vadd.f32 %v610_v40, %v307_v58  ;;  %v337_v13 = vmul.f32 %v614_v53, %v336_v6  ;;  %vm825_vm10 = vmor %vm354_vm1, %vm355_vm15  ;;  %vm841_vm1 = vcmp.ne.s32.totalorder %v565_v25, 0  ;;  %vm853_vm15 = vcmp.ne.s32.totalorder %v569_v35, 0 }
  0x30   : > { %v323_v12 = vadd.f32 %v612_v47, %v322_v5  ;;  %v352_v20 = vmul.f32 %v616_v57, %v351_v9 }
  0x31   : > { %v312_v11 = vsel %vm770_vm2, %v610_v40, %v308_v4  ;;  %vm817_vm2 = vcmp.eq.f32.partialorder %v343_v56, 8.507059e+37  ;;  %v338_v26 = vadd.f32 %v614_v53, %v337_v13 }
  0x32   : > { %v317_v15 = vsel %vm756_vm12, %v316_v54, %v312_v11  ;;  %v327_v22 = vsel %vm792_vm13, %v612_v47, %v323_v12  ;;  %v353_v33 = vadd.f32 %v616_v57, %v352_v20  ;;  %vm962_vm13 = vcmp.lt.s32.totalorder %v695_v21, %v700_v24 }
  0x33   : > { %v388_v29 = vsub.f32 %v317_v15, %v550_v46  ;;  %v332_v32 = vsel %vm329_vm9, %v331_v62, %v327_v22  ;;  %v342_v40 = vsel %vm813_vm7, %v614_v53, %v338_v26  ;;  %vm847_vm7 = vcmp.ne.s32.totalorder %v568_v34, 0  ;;  %vm862_vm9 = vmand %vm777_vm4, %vm962_vm13 }
  0x34   : > { %v389_v42 = vsub.f32 %v332_v32, %v551_v50  ;;  %v347_v43 = vsel %vm817_vm2, %v346_v19, %v342_v40  ;;  %v357_v44 = vsel %vm825_vm10, %v616_v57, %v353_v33  ;;  %vm965_vm2 = vcmp.lt.s32.totalorder %v698_v23, %v700_v24 }
  0x35   : > { %v392_v36 = vand.u32 2147483647, %v388_v29  ;;  %v362_v45 = vsel %vm359_vm3, %v361_v28, %v357_v44  ;;  %v390_v48 = vsub.f32 %v347_v43, %v552_v37  ;;  %vm871_vm10 = vmand %vm841_vm1, %vm965_vm2  ;;  %vm968_vm4 = vcmp.lt.s32.totalorder %v705_v30, %v700_v24 }
  0x36   : > { %v393_v49 = vand.u32 2147483647, %v389_v42  ;;  %v391_v25 = vsub.f32 %v362_v45, %v553_v41  ;;  %vm880_vm3 = vmand %vm847_vm7, %vm968_vm4 }
  0x37   : > { %vm396_vm12 = vcmp.lt.f32.partialorder %v392_v36, 0.5  ;;  %v400_v51 = vmul.f32 %v392_v36, %v392_v36  ;;  %v554_v52 = vadd.f32 -0.25, %v392_v36  ;;  %v394_v53 = vand.u32 2147483647, %v390_v48  ;;  %vm889_vm1 = vmand %vm853_vm15, %vm275_vm8 }
  0x38   : > { %vm397_vm0 = vcmp.lt.f32.partialorder %v393_v49, 0.5  ;;  %v401_v54 = vmul.f32 %v393_v49, %v393_v49  ;;  %v555_v17 = vadd.f32 -0.25, %v393_v49  ;;  %v395_v21 = vand.u32 2147483647, %v391_v25 }
  0x39   : > { %v408_v55 = vsel %vm396_vm12, %v400_v51, %v554_v52  ;;  %vm398_vm13 = vcmp.lt.f32.partialorder %v394_v53, 0.5  ;;  %v402_v57 = vmul.f32 %v394_v53, %v394_v53  ;;  %v556_v23 = vadd.f32 -0.25, %v394_v53 }
  0x3a   : > { %v409_v58 = vsel %vm397_vm0, %v401_v54, %v555_v17  ;;  %vm399_vm12 = vcmp.lt.f32.partialorder %v395_v21, 0.5  ;;  %v403_v30 = vmul.f32 %v395_v21, %v395_v21  ;;  %v557_v60 = vadd.f32 -0.25, %v395_v21 }
  0x3b   : > { %v412_v61 = vsel %vm862_vm9, %v408_v55, 0.0  ;;  %v410_v62 = vsel %vm398_vm13, %v402_v57, %v556_v23  ;;  %v413_v63 = vsel %vm871_vm10, %v409_v58, 0.0  ;;  %v416_v0 = vsel %vm726_vm5, %v408_v55, 0.0 }
  0x3c   : > { %v417_v24 = vsel %vm734_vm6, %v409_v58, 0.0  ;;  %v411_v31 = vsel %vm399_vm12, %v403_v30, %v557_v60  ;;  %v414_v2 = vsel %vm880_vm3, %v410_v62, 0.0  ;;  %v418_v3 = vsel %vm786_vm11, %v410_v62, 0.0 }
  0x3d   : > { %v415_v4 = vsel %vm889_vm1, %v411_v31, 0.0  ;;  %v419_v5 = vsel %vm805_vm14, %v411_v31, 0.0  ;;  %v421_v6 = vadd.f32 %v414_v2, %v412_v61  ;;  %v429_v8 = vadd.f32 %v418_v3, %v416_v0 }
  0x3e   : > { %v422_v38 = vadd.f32 %v415_v4, %v413_v63  ;;  %v430_v9 = vadd.f32 %v419_v5, %v417_v24  ;;  %vm425_vm5 = vcmask 785408  }
  0x40   : > { %v423_v11 = vadd.f32 %v422_v38, %v421_v6  ;;  %v431_v12 = vadd.f32 %v430_v9, %v429_v8 }
  0x41   : > { %437 = sbr.rel (%p558_p8) target bundleno = 267 (0x10b), region = 36 }
  0x42   : > { %v424_v13 = vadd.f32 %v423_v11, %v420_v10  ;;  %v432_v15 = vadd.f32 %v431_v12, %v428_v39 }
  0x44   : > { %426 = vst.msk [vmem:[#allocation2] sm:$0xff] %vm425_vm5, %v424_v13 }
  0x45   : > { %433 = vst.msk [vmem:[#allocation2 + $0x8] sm:$0xff] %vm425_vm5, %v432_v15 }
  0x46   : > { %v461_v43 = vand.u32 127, %v261_v1 }
  0x48   : > { %vm463_vm6 = vcmp.eq.s32.totalorder %v461_v43, 1  ;;  %vm462_vm8 = vcmp.eq.s32.totalorder %v461_v43, 0 }
  0x4b   : > { %v438_v7 = vld [vmem:[#allocation2] sm:$0xff] }
  0x4c   : > { %v439_v16 = vsel %vm425_vm5, %v438_v7, 0.0  ;;  %v449_v14 = vld [vmem:[#allocation2 + $0x8] sm:$0xff] }
  0x4d   : > { %440 = vadd.xlane.f32.xlu0 %v439_v16  ;;  %v450_v18 = vsel %vm425_vm5, %v449_v14, 0.0 }
  0x55   : > { %451 = vadd.xlane.f32.xlu0 %v450_v18 }
  0xc0   : > { %v441_v19 = vpop.xlane.xlu0 %440 }
  0xc1   : > { %v442_v20 = vrot.slane %v441_v19, 4 }
  0xc3   : > { %v443_v22 = vadd.f32 %v442_v20, %v441_v19 }
  0xc5   : > { %v444_v26 = vrot.slane %v443_v22, 2 }
  0xc7   : > { %v445_v27 = vadd.f32 %v444_v26, %v443_v22 }
  0xc8   : > { %v452_v28 = vpop.xlane.xlu0 %451 }
  0xc9   : > { %v453_v29 = vrot.slane %v452_v28, 4  ;;  %v446_v32 = vrot.slane %v445_v27, 1 }
  0xcb   : > { %v454_v33 = vadd.f32 %v453_v29, %v452_v28  ;;  %v447_v37 = vadd.f32 %v446_v32, %v445_v27 }
  0xcd   : > { %v455_v40 = vrot.slane %v454_v33, 2  ;;  %571 = vpush %v447_v37 }
  0xcf   : > { %v456_v41 = vadd.f32 %v455_v40, %v454_v33 }
  0xd1   : > { %v457_v42 = vrot.slane %v456_v41, 1 }
  0xd3   : > { %v458_v36 = vadd.f32 %v457_v42, %v456_v41 }
  0xd5   : > { %573 = vpush %v458_v36 }
  0xfe   : > { %s572_s25 = spop %571 }
  0xff   : > { %v466_v46 = vstv %s572_s25 }
 0x106   : > { %s574_s26 = spop %573 }
 0x107   : > { %v464_v44 = vstv %s574_s26 }
 0x108   : > { %v465_v47 = vsel %vm463_vm6, %v464_v44, 0.0 }
 0x109   : > { %v467_v45 = vsel %vm462_vm8, %v466_v46, %v465_v47 }
 0x10a   : > { %468 = vst [vmem:[%s925_s2] sm:$0xff] %v467_v45 }
 0x10b PF: > { %s12_s11 = sadd.s32 1, %s639_s11   ;;  %s973_s9 = smov %s635_s10 }
 0x10c   : > { %p9_p9 = scmp.ge.s32.totalorder %s12_s11, 4   ;;  %s974_s10 = smov %s976_s12 }
 0x10e   :  { %11 = sbr.rel (!%p9_p9) target bundleno = 2 (0x2), region = 70 }

</bundles_post_ra>
